<compile_context>
chip_gen: v7x
topology: tpu7x:2x2x1
jax: 0.10.0
libtpu: 0.0.40
codegen_flags: <defaults>
</compile_context>

<pallas_src>
import functools
import math

import jax
import jax.numpy as jnp
from jax.experimental import pallas as pl
from jax.experimental.pallas import tpu as pltpu

NUM_CLASSES = 4
ZSIZE = 64        # latent size pinned by the PyTorch module
ZPAD = 128        # latent padded to a full lane width (zero cols/rows; exact)
C_PAD = 128       # lane-dense width for the classifier/softmax slab
SUBLANE = 8       # f32 sublane quantum


def _autoencoder_kernel(x_ref, we_ref, be_ref, wcat_ref, bcat_ref,
                        xc_ref, xre_ref, slab_ref, *, d, b_valid, tile_b):
    # x_ref:    (TILE_B, D)          f32   (streamed batch tile)
    # we_ref:   (D, ZPAD)            bf16  (resident)
    # be_ref:   (1, ZPAD)            f32
    # wcat_ref: (ZPAD, D + C_PAD)    bf16  (decoder || padded classifier, resident)
    # bcat_ref: (1, D + C_PAD)       f32
    # xc_ref:   (B, NUM_CLASSES)     f32   (resident across grid; written on last step)
    # xre_ref:  (TILE_B, D)          bf16  (streamed batch tile)
    # slab_ref: (num_tiles, TILE_B, C_PAD) f32  VMEM scratch for the dim=0 softmax
    i = pl.program_id(0)

    # ---- encoder: in-kernel bf16 cast (free VPU filler), MXU matmul, f32 acc
    xb = x_ref[...].astype(jnp.bfloat16)
    z = jnp.dot(xb, we_ref[...], preferred_element_type=jnp.float32)
    z = jnp.maximum(z + be_ref[...], 0.0)                        # (TILE_B, ZPAD)

    # ---- fused decoder + classifier: one lane-dense matmul over K=ZPAD
    y = jnp.dot(z.astype(jnp.bfloat16), wcat_ref[...],
                preferred_element_type=jnp.float32)
    y = y + bcat_ref[...]                                        # (TILE_B, D+C_PAD)

    # reconstruction = first D lanes (tile-aligned static slice), bf16 writeback
    xre_ref[...] = y[:, :d].astype(xre_ref.dtype)

    # logits = last C_PAD lanes; softmax is over dim=0 (batch) -> cross-tile
    # reduction. Mask rows by GLOBAL row index (handles the ragged last block
    # whose padded rows contain garbage), stash into the VMEM slab.
    logits = y[:, d:]
    row = i * tile_b + jax.lax.broadcasted_iota(jnp.int32, logits.shape, 0)
    logits = jnp.where(row < b_valid, logits, jnp.float32(-1e30))
    slab_ref[i] = logits

    # ---- finalize the dim=0 softmax on the last grid step
    @pl.when(i == pl.num_programs(0) - 1)
    def _finalize():
        nt, tb, cp = slab_ref.shape
        all_logits = slab_ref[...].reshape(nt * tb, cp)
        m = jnp.max(all_logits, axis=0, keepdims=True)
        e = jnp.exp(all_logits - m)                    # padded rows underflow to 0
        denom = jnp.sum(e, axis=0, keepdims=True)      # (1, C_PAD)
        soft = e * pl.reciprocal(denom)                # EUP recip + VPU multiply
        xc_ref[...] = soft[:b_valid, :NUM_CLASSES].astype(xc_ref.dtype)


def autoencoder_forward(x_nchw, packed_params, *, tile_b=None):
    """x_nchw: (B, C, H, W) float32. Returns (x_c (B, 4) f32, x_re (B, C*H*W) bf16)."""
    we_p, be_p, wcat_p, bcat_p = packed_params
    B = x_nchw.shape[0]
    D = math.prod(x_nchw.shape[1:])
    if tile_b is None:
        tile_b = max(SUBLANE, min(256, ((B + SUBLANE - 1) // SUBLANE) * SUBLANE))
    num_tiles = pl.cdiv(B, tile_b)

    # Feed x in its native f32: flatten only (free row-major view), no cast/pad.
    x2d = x_nchw.reshape(B, D)

    out_shapes = (
        jax.ShapeDtypeStruct((B, NUM_CLASSES), jnp.float32),   # x_c
        jax.ShapeDtypeStruct((B, D), jnp.bfloat16),            # x_re
    )

    cost = pl.CostEstimate(
        flops=2 * B * D * ZPAD + 2 * B * ZPAD * (D + C_PAD),
        transcendentals=num_tiles * tile_b * C_PAD,
        bytes_accessed=(x2d.size * 4 + we_p.size * 2 + wcat_p.size * 2
                        + be_p.size * 4 + bcat_p.size * 4
                        + B * D * 2 + B * NUM_CLASSES * 4),
    )

    # VMEM budget: double-buffered x / x_re tiles + resident weights + slab.
    vmem_need = (2 * tile_b * D * 4 + 2 * tile_b * D * 2
                 + 2 * (we_p.size + wcat_p.size) * 2
                 + num_tiles * tile_b * C_PAD * 4
                 + 2 * (be_p.size + bcat_p.size) * 4
                 + 2 * B * NUM_CLASSES * 4)
    # Explicit scoped-VMEM limit, kept below v7x's 64 MiB physical VMEM.
    vmem_limit = int(min(max(2 * vmem_need, 16 * 2**20), 48 * 2**20))

    grid_spec = pltpu.PrefetchScalarGridSpec(
        num_scalar_prefetch=0,
        grid=(num_tiles,),
        in_specs=[
            pl.BlockSpec((tile_b, D), lambda i: (i, 0)),          # x tile (streamed)
            pl.BlockSpec((D, ZPAD), lambda i: (0, 0)),            # We (resident)
            pl.BlockSpec((1, ZPAD), lambda i: (0, 0)),            # be
            pl.BlockSpec((ZPAD, D + C_PAD), lambda i: (0, 0)),    # Wcat (resident)
            pl.BlockSpec((1, D + C_PAD), lambda i: (0, 0)),       # bcat
        ],
        out_specs=(
            pl.BlockSpec((B, NUM_CLASSES), lambda i: (0, 0)),     # x_c (resident)
            pl.BlockSpec((tile_b, D), lambda i: (i, 0)),          # x_re tile
        ),
        scratch_shapes=[pltpu.VMEM((num_tiles, tile_b, C_PAD), jnp.float32)],
    )

    x_c, x_re = pl.pallas_call(
        functools.partial(_autoencoder_kernel, d=D, b_valid=B, tile_b=tile_b),
        out_shape=out_shapes,
        grid_spec=grid_spec,
        compiler_params=pltpu.CompilerParams(
            # dim=0 softmax makes the batch axis a true reduction (resident x_c
            # + slab finalize), so it must be "arbitrary", not "parallel".
            dimension_semantics=("arbitrary",),
            vmem_limit_bytes=vmem_limit,
        ),
        cost_estimate=cost,
    )(x2d, we_p, be_p, wcat_p, bcat_p)

    return x_c, x_re


def init_params(key, D):
    """Deterministic synthetic parameters (PyTorch-Linear-style uniform init)."""
    ks = jax.random.split(key, 6)

    def lin(kw, kb, fan_in, fan_out):
        bound = 1.0 / jnp.sqrt(jnp.float32(fan_in))
        w = jax.random.uniform(kw, (fan_in, fan_out), jnp.float32, -bound, bound)
        b = jax.random.uniform(kb, (1, fan_out), jnp.float32, -bound, bound)
        return w, b

    we, be = lin(ks[0], ks[1], D, ZSIZE)             # encoder
    wd, bd = lin(ks[2], ks[3], ZSIZE, D)             # decoder
    wc, bc = lin(ks[4], ks[5], ZSIZE, NUM_CLASSES)   # classifier
    return we, be, wd, bd, wc, bc


def pack_params(raw_params):
    """Kernel-ready params: bf16 weights, latent zero-padded to 128 lanes,
    decoder+classifier fused into one lane-dense RHS (all padding exact zeros)."""
    we, be, wd, bd, wc, bc = raw_params
    D = we.shape[0]

    we_p = jnp.zeros((D, ZPAD), jnp.float32).at[:, :ZSIZE].set(we).astype(jnp.bfloat16)
    be_p = jnp.zeros((1, ZPAD), jnp.float32).at[:, :ZSIZE].set(be)

    wc_pad = jnp.zeros((ZSIZE, C_PAD), jnp.float32).at[:, :NUM_CLASSES].set(wc)
    bc_pad = jnp.zeros((1, C_PAD), jnp.float32).at[:, :NUM_CLASSES].set(bc)
    wcat = jnp.concatenate([wd, wc_pad], axis=1)                        # (64, D+128)
    wcat_p = (jnp.zeros((ZPAD, D + C_PAD), jnp.float32)
              .at[:ZSIZE, :].set(wcat).astype(jnp.bfloat16))            # (128, D+128)
    bcat_p = jnp.concatenate([bd, bc_pad], axis=1)                      # (1, D+128) f32
    return we_p, be_p, wcat_p, bcat_p


def reference_forward(x_nchw, raw_params):
    """Pure-JAX reference mirroring the kernel's bf16-weight numerics."""
    we, be, wd, bd, wc, bc = raw_params
    B = x_nchw.shape[0]
    x2d = x_nchw.reshape(B, -1)

    def q(a):  # same bf16 quantization the kernel's matmul inputs see
        return a.astype(jnp.bfloat16).astype(jnp.float32)

    z = jnp.maximum(q(x2d) @ q(we) + be, 0.0)
    zq = q(z)
    x_re = zq @ q(wd) + bd
    logits = zq @ q(wc) + bc
    x_c = jax.nn.softmax(logits, axis=0)             # dim=0, like F.softmax(x, 0)
    return x_c, x_re


if __name__ == "__main__":
    key = jax.random.PRNGKey(0)
    k_x, k_p = jax.random.split(key)

    B, C, H, W = 2, 4, 16, 16
    x = jax.random.normal(k_x, (B, C, H, W), dtype=jnp.float32)
    raw_params = init_params(k_p, C * H * W)
    packed = pack_params(raw_params)

    fwd = jax.jit(autoencoder_forward)
    x_c, x_re = fwd(x, packed)
    jax.block_until_ready((x_c, x_re))

    # sanity check against a pure-JAX reference with matching numerics
    ref_c, ref_re = reference_forward(x, raw_params)
    assert x_c.shape == (B, NUM_CLASSES) and x_re.shape == (B, C * H * W)
    assert jnp.allclose(x_c, ref_c, atol=1e-4, rtol=1e-4)
    assert jnp.allclose(x_re.astype(jnp.float32), ref_re, atol=1e-2, rtol=1e-2)

    print("KERNEL_OK")
</pallas_src>

<mosaic_0001>
module attributes {stable_mosaic.version = 11 : i64} {
  func.func @_autoencoder_kernel(%arg0: i32, %arg1: memref<8x1024xf32, #tpu.memory_space<vmem>>, %arg2: memref<1024x128xbf16, #tpu.memory_space<vmem>>, %arg3: memref<1x128xf32, #tpu.memory_space<vmem>>, %arg4: memref<128x1152xbf16, #tpu.memory_space<vmem>>, %arg5: memref<1x1152xf32, #tpu.memory_space<vmem>>, %arg6: memref<2x4xf32, #tpu.memory_space<vmem>>, %arg7: memref<8x1024xbf16, #tpu.memory_space<vmem>>, %arg8: memref<1x8x128xf32, #tpu.memory_space<vmem>>) attributes {dimension_semantics = [#tpu.dimension_semantics<arbitrary>], iteration_bounds = array<i64: 1>, scalar_prefetch = 0 : i64, scratch_operands = 1 : i64, tpu.core_type = #tpu.core_type<tc>, window_params = [{transform_indices = @transform_0, window_bounds = array<i64: 8, 1024>}, {pipeline_mode = #tpu.pipeline_mode<synchronous>, transform_indices = @transform_1, window_bounds = array<i64: 1024, 128>}, {pipeline_mode = #tpu.pipeline_mode<synchronous>, transform_indices = @transform_2, window_bounds = array<i64: 1, 128>}, {pipeline_mode = #tpu.pipeline_mode<synchronous>, transform_indices = @transform_3, window_bounds = array<i64: 128, 1152>}, {pipeline_mode = #tpu.pipeline_mode<synchronous>, transform_indices = @transform_4, window_bounds = array<i64: 1, 1152>}, {pipeline_mode = #tpu.pipeline_mode<synchronous>, transform_indices = @transform_5, window_bounds = array<i64: 2, 4>}, {transform_indices = @transform_6, window_bounds = array<i64: 8, 1024>}]} {
    %c0 = arith.constant 0 : index
    %c0_0 = arith.constant 0 : index
    %0 = vector.load %arg1[%c0, %c0_0] : memref<8x1024xf32, #tpu.memory_space<vmem>>, vector<8x1024xf32>
    %1 = arith.truncf %0 : vector<8x1024xf32> to vector<8x1024xbf16>
    %c0_1 = arith.constant 0 : index
    %c0_2 = arith.constant 0 : index
    %2 = vector.load %arg2[%c0_1, %c0_2] : memref<1024x128xbf16, #tpu.memory_space<vmem>>, vector<1024x128xbf16>
    %cst = arith.constant dense<0.000000e+00> : vector<8x128xf32>
    %3 = tpu.matmul %1, %2, %cst {dimension_numbers = #tpu.dot_dimension_numbers<[1], [0], [0], [1], [0, 0, 1, 1], [], []>} : vector<8x1024xbf16>, vector<1024x128xbf16>, vector<8x128xf32> -> vector<8x128xf32>
    %c0_3 = arith.constant 0 : index
    %c0_4 = arith.constant 0 : index
    %4 = vector.load %arg3[%c0_3, %c0_4] : memref<1x128xf32, #tpu.memory_space<vmem>>, vector<1x128xf32>
    %5 = vector.broadcast %4 : vector<1x128xf32> to vector<8x128xf32>
    %6 = arith.addf %3, %5 : vector<8x128xf32>
    %cst_5 = arith.constant 0.000000e+00 : f32
    %7 = vector.broadcast %cst_5 : f32 to vector<8x128xf32>
    %8 = arith.maximumf %6, %7 : vector<8x128xf32>
    %9 = arith.truncf %8 : vector<8x128xf32> to vector<8x128xbf16>
    %c0_6 = arith.constant 0 : index
    %c0_7 = arith.constant 0 : index
    %10 = vector.load %arg4[%c0_6, %c0_7] : memref<128x1152xbf16, #tpu.memory_space<vmem>>, vector<128x1152xbf16>
    %cst_8 = arith.constant dense<0.000000e+00> : vector<8x1152xf32>
    %11 = tpu.matmul %9, %10, %cst_8 {dimension_numbers = #tpu.dot_dimension_numbers<[1], [0], [0], [1], [0, 0, 1, 1], [], []>} : vector<8x128xbf16>, vector<128x1152xbf16>, vector<8x1152xf32> -> vector<8x1152xf32>
    %c0_9 = arith.constant 0 : index
    %c0_10 = arith.constant 0 : index
    %12 = vector.load %arg5[%c0_9, %c0_10] : memref<1x1152xf32, #tpu.memory_space<vmem>>, vector<1x1152xf32>
    %13 = vector.broadcast %12 : vector<1x1152xf32> to vector<8x1152xf32>
    %14 = arith.addf %11, %13 : vector<8x1152xf32>
    %15 = vector.extract_strided_slice %14 {offsets = [0, 0], sizes = [8, 1024], strides = [1, 1]} : vector<8x1152xf32> to vector<8x1024xf32>
    %16 = arith.truncf %15 : vector<8x1024xf32> to vector<8x1024xbf16>
    %c0_11 = arith.constant 0 : index
    %c0_12 = arith.constant 0 : index
    %17 = vector.load %arg7[%c0_11, %c0_12] : memref<8x1024xbf16, #tpu.memory_space<vmem>>, vector<8x1024xbf16>
    tpu.vector_store %arg7[%c0_11, %c0_12], %16 {strides = array<i32>} : memref<8x1024xbf16, #tpu.memory_space<vmem>>, vector<8x1024xbf16>,
    %18 = vector.extract_strided_slice %14 {offsets = [0, 1024], sizes = [8, 128], strides = [1, 1]} : vector<8x1152xf32> to vector<8x128xf32>
    %c8_i32 = arith.constant 8 : i32
    %19 = arith.muli %arg0, %c8_i32 : i32
    %20 = tpu.iota {dimensions = array<i32: 0>} : vector<8x128xi32>
    %21 = vector.broadcast %19 : i32 to vector<8x128xi32>
    %22 = arith.addi %21, %20 : vector<8x128xi32>
    %c2_i32 = arith.constant 2 : i32
    %23 = vector.broadcast %c2_i32 : i32 to vector<8x128xi32>
    %24 = arith.cmpi slt, %22, %23 : vector<8x128xi32>
    %cst_13 = arith.constant -1.000000e+30 : f32
    %25 = vector.broadcast %cst_13 : f32 to vector<8x128xf32>
    %26 = arith.select %24, %18, %25 : vector<8x128xi1>, vector<8x128xf32>
    %27 = arith.index_cast %arg0 : i32 to index
    %c0_14 = arith.constant 0 : index
    %c0_15 = arith.constant 0 : index
    %28 = vector.load %arg8[%27, %c0_14, %c0_15] : memref<1x8x128xf32, #tpu.memory_space<vmem>>, vector<1x8x128xf32>
    %29 = vector.shape_cast %28 : vector<1x8x128xf32> to vector<8x128xf32>
    %30 = vector.shape_cast %26 : vector<8x128xf32> to vector<1x8x128xf32>
    tpu.vector_store %arg8[%27, %c0_14, %c0_15], %30 {strides = array<i32>} : memref<1x8x128xf32, #tpu.memory_space<vmem>>, vector<1x8x128xf32>,
    %c0_i32 = arith.constant 0 : i32
    %31 = arith.cmpi eq, %arg0, %c0_i32 : i32
    %32 = arith.extui %31 : i1 to i32
    %c0_i32_16 = arith.constant 0 : i32
    %33 = arith.cmpi ne, %32, %c0_i32_16 : i32
    scf.if %33 {
      %c0_17 = arith.constant 0 : index
      %c0_18 = arith.constant 0 : index
      %c0_19 = arith.constant 0 : index
      %34 = vector.load %arg8[%c0_17, %c0_18, %c0_19] : memref<1x8x128xf32, #tpu.memory_space<vmem>>, vector<1x8x128xf32>
      %35 = vector.shape_cast %34 : vector<1x8x128xf32> to vector<8x128xf32>
      %cst_20 = arith.constant dense<0xFF800000> : vector<128xf32>
      %36 = vector.multi_reduction <maximumf>, %35, %cst_20 [0] : vector<8x128xf32> to vector<128xf32>
      %37 = vector.shape_cast %36 : vector<128xf32> to vector<1x128xf32>
      %38 = vector.broadcast %37 : vector<1x128xf32> to vector<8x128xf32>
      %39 = arith.subf %35, %38 : vector<8x128xf32>
      %40 = math.exp %39 : vector<8x128xf32>
      %cst_21 = arith.constant dense<0.000000e+00> : vector<128xf32>
      %41 = vector.multi_reduction <add>, %40, %cst_21 [0] : vector<8x128xf32> to vector<128xf32>
      %42 = vector.shape_cast %41 : vector<128xf32> to vector<1x128xf32>
      %43 = tpu.reciprocal %42 : vector<1x128xf32> -> vector<1x128xf32>
      %44 = vector.broadcast %43 : vector<1x128xf32> to vector<8x128xf32>
      %45 = arith.mulf %40, %44 : vector<8x128xf32>
      %46 = vector.extract_strided_slice %45 {offsets = [0, 0], sizes = [2, 4], strides = [1, 1]} : vector<8x128xf32> to vector<2x4xf32>
      %c0_22 = arith.constant 0 : index
      %c0_23 = arith.constant 0 : index
      %47 = vector.load %arg6[%c0_22, %c0_23] : memref<2x4xf32, #tpu.memory_space<vmem>>, vector<2x4xf32>
      tpu.vector_store %arg6[%c0_22, %c0_23], %46 {strides = array<i32>} : memref<2x4xf32, #tpu.memory_space<vmem>>, vector<2x4xf32>,
    } else {
    }
    return
  }
  func.func @transform_0(%arg0: i32) -> (i32, i32) {
    %c0_i32 = arith.constant 0 : i32
    %c0_i32_0 = arith.constant 0 : i32
    return %arg0, %c0_i32 : i32, i32
  }
  func.func @transform_1(%arg0: i32) -> (i32, i32) {
    %c0_i32 = arith.constant 0 : i32
    %c0_i32_0 = arith.constant 0 : i32
    %c0_i32_1 = arith.constant 0 : i32
    return %c0_i32, %c0_i32_0 : i32, i32
  }
  func.func @transform_2(%arg0: i32) -> (i32, i32) {
    %c0_i32 = arith.constant 0 : i32
    %c0_i32_0 = arith.constant 0 : i32
    %c0_i32_1 = arith.constant 0 : i32
    return %c0_i32, %c0_i32_0 : i32, i32
  }
  func.func @transform_3(%arg0: i32) -> (i32, i32) {
    %c0_i32 = arith.constant 0 : i32
    %c0_i32_0 = arith.constant 0 : i32
    %c0_i32_1 = arith.constant 0 : i32
    return %c0_i32, %c0_i32_0 : i32, i32
  }
  func.func @transform_4(%arg0: i32) -> (i32, i32) {
    %c0_i32 = arith.constant 0 : i32
    %c0_i32_0 = arith.constant 0 : i32
    %c0_i32_1 = arith.constant 0 : i32
    return %c0_i32, %c0_i32_0 : i32, i32
  }
  func.func @transform_5(%arg0: i32) -> (i32, i32) {
    %c0_i32 = arith.constant 0 : i32
    %c0_i32_0 = arith.constant 0 : i32
    %c0_i32_1 = arith.constant 0 : i32
    return %c0_i32, %c0_i32_0 : i32, i32
  }
  func.func @transform_6(%arg0: i32) -> (i32, i32) {
    %c0_i32 = arith.constant 0 : i32
    %c0_i32_0 = arith.constant 0 : i32
    return %arg0, %c0_i32 : i32, i32
  }
}

</mosaic_0001>

<bundles_post_ra>
// kernel: autoencoder_forward.1
= control target key start
LH: loop header
LB: loop body
LE: loop exit
PB: predicated region body
PF: predicated region fallthrough
CT: control target
= control target key end

     0   :  { %12 = vsyncpa [#allocation4], 0  ;;  %s2411_s0 = inlined_call_operand.vmem [shape: f32[2,1024], index: 0, kind: input, shape index: {}]   ;;  %s2412_s1 = inlined_call_operand.hbm [shape: bf16[1024,128], index: 1, kind: input, shape index: {}]   ;;  %s2413_s2 = inlined_call_operand.vmem [shape: f32[1,128], index: 2, kind: input, shape index: {}]   ;;  %s2414_s3 = inlined_call_operand.hbm [shape: bf16[128,1152], index: 3, kind: input, shape index: {}]   ;;  %s2415_s4 = inlined_call_operand.vmem [shape: f32[1,1152], index: 4, kind: input, shape index: {}]   ;;  %s2416_s5 = inlined_call_operand.hbm [shape: f32[2,4], index: 5, kind: output, shape index: {0}]   ;;  %s2417_s6 = inlined_call_operand.hbm [shape: bf16[2,1024], index: 6, kind: output, shape index: {1}]  }
   0x1   :  { %13 = vsyncpa [#allocation7], 0 }
   0x2   :  { %14 = vsyncpa [#allocation5], 0 }
   0x3   :  { %15 = vsyncpa [#allocation10], 0  ;;  %s2250_s21 = smov [#allocation3]   ;;  %s2154_s25 = scalar_lea.hbm %s2412_s1, 8192 }
   0x4   :  { %s23_s22 = sshll.u32 %s2250_s21, 4  ;;  %p2155_p0 = scmp.ne.s32.totalorder %s2412_s1, %s2154_s25  ;;  %s24_s22 = int_to_ptr.vmem [resolvable:$true] %s23_s22 }
   0x5   :  { %p2158_p1 = scmp.lt.u32.totalorder %s2154_s25, %s2412_s1 }
   0x7   :  { %p2160_p2 = pnand %p2158_p1, %p2155_p0 }
   0x9   :  { %2163 = shalt.err (!%p2160_p2)
}
   0xa   :  { %s2164_s30 = scalar_lea.vmem %s24_s22, 8192  ;;  %p2169_p4 = scmp.lt.s32.totalorder %s24_s22, %s24_s22 }
   0xb   :  { %p2165_p3 = scmp.ne.s32.totalorder %s24_s22, %s2164_s30  ;;  %p2170_p5 = scmp.lt.s32.totalorder %s2164_s30, %s2164_s30 }
   0xd   :  { %p2171_p6 = por %p2170_p5, %p2169_p4 }
   0xf   :  { %p2172_p7 = pnand %p2171_p6, %p2165_p3 }
  0x11   :  { %2175 = shalt.err (!%p2172_p7)
}
  0x12   :  { %s2251_s7 = smov 64   ;;  %s2252_s8 = smov 4  }
  0x13   :  { %29 = dma.hbm_to_vmem [thread:$0]  %s2412_s1, 8192, %s24_s22, [#allocation4], %s2251_s7, %s2251_s7, %s2252_s8  }
  0x14   :  { %s2253_s11 = smov [#allocation6]   ;;  %s2176_s15 = scalar_lea.hbm %s2414_s3, 9216 }
  0x15   :  { %s37_s12 = sshll.u32 %s2253_s11, 4  ;;  %p2177_p8 = scmp.ne.s32.totalorder %s2414_s3, %s2176_s15  ;;  %s38_s12 = int_to_ptr.vmem [resolvable:$true] %s37_s12 }
  0x16   :  { %p2180_p9 = scmp.lt.u32.totalorder %s2176_s15, %s2414_s3 }
  0x18   :  { %p2182_p10 = pnand %p2180_p9, %p2177_p8 }
  0x1a   :  { %2185 = shalt.err (!%p2182_p10)
}
  0x1b   :  { %s2186_s20 = scalar_lea.vmem %s38_s12, 9216  ;;  %p2191_p12 = scmp.lt.s32.totalorder %s38_s12, %s38_s12 }
  0x1c   :  { %p2187_p11 = scmp.ne.s32.totalorder %s38_s12, %s2186_s20  ;;  %p2192_p13 = scmp.lt.s32.totalorder %s2186_s20, %s2186_s20 }
  0x1e   :  { %p2193_p0 = por %p2192_p13, %p2191_p12 }
  0x20   :  { %p2194_p1 = pnand %p2193_p0, %p2187_p11 }
  0x22   :  { %2197 = shalt.err (!%p2194_p1)
}
  0x23   :  { %s2254_s1 = smov 576   ;;  %s2255_s21 = smov 36  }
  0x24   :  { %43 = dma.hbm_to_vmem [thread:$0]  %s2414_s3, 9216, %s38_s12, [#allocation7], %s2254_s1, %s2254_s1, %s2255_s21  }
  0x25   :  { %2242 = dma.done.wait [#allocation4], 8192  }
  0x26   :  { %2243 = vsyncadd [#allocation4], 4294959104 }
  0x27   :  { %2244 = dma.done.wait [#allocation7], 9216  }
  0x28   :  { %2245 = vsyncadd [#allocation7], 4294958080  ;;  %v1970_v0 = vld [vmem:[#allocation3 + $0x40] sm:$0xff]   ;;  %v1974_v4 = vld [vmem:[#allocation3 + $0x48] sm:$0xff]   ;;  %v2256_v24 = vmov 1983009808   ;;  %v76_v26 = vlaneseq }
  0x29   :  { %v1971_v1 = vld [vmem:[#allocation3 + $0xc0] sm:$0xff]   ;;  %1838 = vmatprep.subr.bf16.mxu0 %v1970_v0  ;;  %v1975_v5 = vld [vmem:[#allocation3 + $0xc8] sm:$0xff]   ;;  %v1978_v8 = vld [vmem:[#allocation3 + $0x50] sm:$0xff]   ;;  %v74_v25 = vunpack.c.l.s4 %v2256_v24  ;;  %vm2259_vm0 = vmmov 0   ;;  %vm1662_vm2 = vcmask 25600  }
  0x2a   :  { %v1972_v2 = vld [vmem:[#allocation3] sm:$0xff]   ;;  %1860 = vmatprep.subr.bf16.mxu1 %v1971_v1  ;;  %v1976_v6 = vld [vmem:[#allocation3 + $0x8] sm:$0xff]   ;;  %v1979_v9 = vld [vmem:[#allocation3 + $0xd0] sm:$0xff]   ;;  %v2324_v32 = vshrl.u32 %v76_v26, 7 }
  0x2b   :  { %v1973_v3 = vld [vmem:[#allocation3 + $0x80] sm:$0xff]   ;;  %1839 = vmatpush3.bf16.msra.mxu0 %v1972_v2  ;;  %v1977_v7 = vld [vmem:[#allocation3 + $0x88] sm:$0xff]   ;;  %v1980_v10 = vld [vmem:[#allocation3 + $0x10] sm:$0xff]   ;;  %v75_v31 = vunpack.c.0.s8 %v74_v25 }
  0x2c   :  { %1861 = vmatpush3.bf16.msra.mxu1 %v1973_v3  ;;  %1840 = vmatprep.subr.bf16.mxu0 %v1974_v4  ;;  %v1981_v11 = vld [vmem:[#allocation3 + $0x90] sm:$0xff]   ;;  %v1982_v12 = vld [vmem:[#allocation3 + $0x58] sm:$0xff]   ;;  %v1986_v16 = vld [vmem:[#allocation3 + $0x60] sm:$0xff]   ;;  %vm1636_vm1 = vcmp.lt.s32.totalorder %v2324_v32, 2 }
  0x2d   :  { %1862 = vmatprep.subr.bf16.mxu1 %v1975_v5  ;;  %v1983_v13 = vld [vmem:[#allocation3 + $0xd8] sm:$0xff]   ;;  %v1987_v17 = vld [vmem:[#allocation3 + $0xe0] sm:$0xff]   ;;  %v1990_v20 = vld [vmem:[#allocation3 + $0x68] sm:$0xff]   ;;  %v2327_v37 = vsub.s32 %v75_v31, %v2324_v32 }
  0x2e   :  { %v1984_v14 = vld [vmem:[#allocation3 + $0x18] sm:$0xff]   ;;  %v1988_v18 = vld [vmem:[#allocation3 + $0x20] sm:$0xff]   ;;  %v1991_v21 = vld [vmem:[#allocation3 + $0xe8] sm:$0xff]  }
  0x2f   :  { %1841 = vmatpush3.bf16.msra.mxu0 %v1976_v6  ;;  %v1985_v15 = vld [vmem:[#allocation3 + $0x98] sm:$0xff]   ;;  %v1989_v19 = vld [vmem:[#allocation3 + $0xa0] sm:$0xff]   ;;  %v1992_v22 = vld [vmem:[#allocation3 + $0x28] sm:$0xff]  }
  0x30   :  { %1863 = vmatpush3.bf16.msra.mxu1 %v1977_v7  ;;  %1842 = vmatprep.subr.bf16.mxu0 %v1978_v8  ;;  %v1993_v23 = vld [vmem:[#allocation3 + $0xa8] sm:$0xff]   ;;  %v1994_v27 = vld [vmem:[#allocation3 + $0x70] sm:$0xff]   ;;  %v1998_v33 = vld [vmem:[#allocation3 + $0x78] sm:$0xff]  }
  0x31   :  { %1864 = vmatprep.subr.bf16.mxu1 %v1979_v9  ;;  %v1995_v28 = vld [vmem:[#allocation3 + $0xf0] sm:$0xff]   ;;  %v1999_v34 = vld [vmem:[#allocation3 + $0xf8] sm:$0xff]   ;;  %v2008_v44 = vld [vmem:[#allocation3 + $0x140] sm:$0xff]  }
  0x32   :  { %v1996_v29 = vld [vmem:[#allocation3 + $0x30] sm:$0xff]   ;;  %v2000_v35 = vld [vmem:[#allocation3 + $0x38] sm:$0xff]   ;;  %v2009_v47 = vld [vmem:[#allocation3 + $0x1c0] sm:$0xff]  }
  0x33   :  { %1843 = vmatpush3.bf16.msra.mxu0 %v1980_v10  ;;  %v1997_v30 = vld [vmem:[#allocation3 + $0xb0] sm:$0xff]   ;;  %v2001_v36 = vld [vmem:[#allocation3 + $0xb8] sm:$0xff]   ;;  %v2010_v50 = vld [vmem:[#allocation3 + $0x100] sm:$0xff]  }
  0x34   :  { %1865 = vmatpush3.bf16.msra.mxu1 %v1981_v11  ;;  %1844 = vmatprep.subr.bf16.mxu0 %v1982_v12  ;;  %v2002_v38 = vld [vmem:[%s2411_s0] ss:$16 sps:$4 sm:$0xff]   ;;  %v2006_v40 = vld [vmem:[%s2411_s0 + $0x4] ss:$16 sps:$4 sm:$0xff]   ;;  %v2012_v56 = vld [vmem:[#allocation3 + $0x148] sm:$0xff]  }
  0x35   :  { %1866 = vmatprep.subr.bf16.mxu1 %v1983_v13  ;;  %v2004_v39 = vld [vmem:[%s2411_s0 + $0x20] ss:$16 sps:$4 sm:$0xff]   ;;  %v2007_v41 = vld [vmem:[%s2411_s0 + $0x24] ss:$16 sps:$4 sm:$0xff]   ;;  %v79_v42 = vrot.slane %v2002_v38, %v2327_v37  ;;  %v86_v45 = vrot.slane %v2006_v40, %v2327_v37  ;;  %v2013_v59 = vld [vmem:[#allocation3 + $0x1c8] sm:$0xff]  }
  0x36   :  { %v93_v43 = vrot.slane %v2004_v39, %v2327_v37  ;;  %v100_v46 = vrot.slane %v2007_v41, %v2327_v37  ;;  %v2011_v53 = vld [vmem:[#allocation3 + $0x180] sm:$0xff]   ;;  %v2014_v60 = vld [vmem:[#allocation3 + $0x108] sm:$0xff]   ;;  %v2016_v62 = vld [vmem:[#allocation3 + $0x150] sm:$0xff]  }
  0x37   :  { %1845 = vmatpush3.bf16.msra.mxu0 %v1984_v14  ;;  %v2015_v61 = vld [vmem:[#allocation3 + $0x188] sm:$0xff]   ;;  %v2017_v63 = vld [vmem:[#allocation3 + $0x1d0] sm:$0xff]   ;;  %v2020_v2 = vld [vmem:[#allocation3 + $0x158] sm:$0xff]  }
  0x38   :  { %1867 = vmatpush3.bf16.msra.mxu1 %v1985_v15  ;;  %1846 = vmatprep.subr.bf16.mxu0 %v1986_v16  ;;  %v102_v48 = vcombine.high %v79_v42, %v93_v43  ;;  %v101_v49 = vcombine.low %v79_v42, %v93_v43  ;;  %v104_v51 = vcombine.high %v86_v45, %v100_v46  ;;  %v2018_v0 = vld [vmem:[#allocation3 + $0x110] sm:$0xff]   ;;  %v2021_v3 = vld [vmem:[#allocation3 + $0x1d8] sm:$0xff]   ;;  %v2024_v6 = vld [vmem:[#allocation3 + $0x160] sm:$0xff]  }
  0x39   :  { %1868 = vmatprep.subr.bf16.mxu1 %v1987_v17  ;;  %v103_v52 = vcombine.low %v86_v45, %v100_v46  ;;  %v2019_v1 = vld [vmem:[#allocation3 + $0x190] sm:$0xff]   ;;  %v2022_v4 = vld [vmem:[#allocation3 + $0x118] sm:$0xff]   ;;  %v2025_v7 = vld [vmem:[#allocation3 + $0x1e0] sm:$0xff]  }
  0x3a   :  { %v150_v54 = vpack.c.bf16 %v102_v48, %v102_v48  ;;  %v149_v55 = vpack.c.bf16 %v101_v49, %v101_v49  ;;  %v152_v57 = vpack.c.bf16 %v104_v51, %v104_v51  ;;  %v2023_v5 = vld [vmem:[#allocation3 + $0x198] sm:$0xff]   ;;  %v2026_v8 = vld [vmem:[#allocation3 + $0x120] sm:$0xff]   ;;  %v2028_v10 = vld [vmem:[#allocation3 + $0x168] sm:$0xff]  }
  0x3b   :  { %1847 = vmatpush3.bf16.msra.mxu0 %v1988_v18  ;;  %v151_v58 = vpack.c.bf16 %v103_v52, %v103_v52  ;;  %v2027_v9 = vld [vmem:[#allocation3 + $0x1a0] sm:$0xff]   ;;  %v2029_v11 = vld [vmem:[#allocation3 + $0x1e8] sm:$0xff]   ;;  %v2032_v14 = vld [vmem:[#allocation3 + $0x170] sm:$0xff]  }
  0x3c   :  { %1869 = vmatpush3.bf16.msra.mxu1 %v1989_v19  ;;  %1848 = vmatprep.subr.bf16.mxu0 %v1990_v20  ;;  %v2030_v12 = vld [vmem:[#allocation3 + $0x128] sm:$0xff]   ;;  %v2033_v15 = vld [vmem:[#allocation3 + $0x1f0] sm:$0xff]   ;;  %v2036_v18 = vld [vmem:[#allocation3 + $0x178] sm:$0xff]  }
  0x3d   :  { %1870 = vmatprep.subr.bf16.mxu1 %v1991_v21  ;;  %708 = vmatprep.mubr.bf16.mxu0 %v150_v54  ;;  %v2031_v13 = vld [vmem:[#allocation3 + $0x1a8] sm:$0xff]   ;;  %v2034_v16 = vld [vmem:[#allocation3 + $0x130] sm:$0xff]   ;;  %v2037_v19 = vld [vmem:[#allocation3 + $0x1f8] sm:$0xff]  }
  0x3e   :  { %748 = vmatprep.mubr.bf16.mxu1 %v152_v57  ;;  %v2035_v17 = vld [vmem:[#allocation3 + $0x1b0] sm:$0xff]   ;;  %v2038_v20 = vld [vmem:[#allocation3 + $0x138] sm:$0xff]   ;;  %v2046_v40 = vld [vmem:[#allocation6] ss:$36 sps:$4 sm:$0xff]  }
  0x3f   :  { %1849 = vmatpush3.bf16.msra.mxu0 %v1992_v22  ;;  %v2039_v21 = vld [vmem:[#allocation3 + $0x1b8] sm:$0xff]   ;;  %v2048_v41 = vld [vmem:[#allocation6 + $0x4] ss:$36 sps:$4 sm:$0xff]   ;;  %v2051_v43 = vld [vmem:[#allocation6 + $0xc] ss:$36 sps:$4 sm:$0xff]  }
  0x40   :  { %1871 = vmatpush3.bf16.msra.mxu1 %v1993_v23  ;;  %1850 = vmatprep.subr.bf16.mxu0 %v1994_v27  ;;  %v2040_v22 = vld [vmem:[%s2411_s0 + $0x8] ss:$16 sps:$4 sm:$0xff]   ;;  %v2044_v24 = vld [vmem:[%s2411_s0 + $0xc] ss:$16 sps:$4 sm:$0xff]   ;;  %v2055_v46 = vld [vmem:[#allocation6 + $0x50] ss:$36 sps:$4 sm:$0xff]  }
  0x41   :  { %1872 = vmatprep.subr.bf16.mxu1 %v1995_v28  ;;  %v2042_v23 = vld [vmem:[%s2411_s0 + $0x28] ss:$16 sps:$4 sm:$0xff]   ;;  %v2045_v25 = vld [vmem:[%s2411_s0 + $0x2c] ss:$16 sps:$4 sm:$0xff]   ;;  %v115_v26 = vrot.slane %v2040_v22, %v2327_v37  ;;  %v122_v28 = vrot.slane %v2044_v24, %v2327_v37  ;;  %v2058_v49 = vld [vmem:[#allocation6 + $0x90] ss:$36 sps:$4 sm:$0xff]  }
  0x42   :  { %v129_v27 = vrot.slane %v2042_v23, %v2327_v37  ;;  %v2049_v42 = vld [vmem:[#allocation6 + $0x8] ss:$36 sps:$4 sm:$0xff]   ;;  %v2063_v48 = vld [vmem:[#allocation6 + $0x9c] ss:$36 sps:$4 sm:$0xff]  }
  0x43   :  { %1851 = vmatpush3.bf16.msra.mxu0 %v1996_v29  ;;  %v136_v29 = vrot.slane %v2045_v25, %v2327_v37  ;;  %v2057_v37 = vld [vmem:[#allocation6 + $0x54] ss:$36 sps:$4 sm:$0xff]   ;;  %v2052_v45 = vld [vmem:[#allocation6 + $0x48] ss:$36 sps:$4 sm:$0xff]   ;;  %v2066_v51 = vld [vmem:[#allocation6 + $0xdc] ss:$36 sps:$4 sm:$0xff]  }
  0x44   :  { %1873 = vmatpush3.bf16.msra.mxu1 %v1997_v30  ;;  %1852 = vmatprep.subr.bf16.mxu0 %v1998_v33  ;;  %v138_v30 = vcombine.high %v115_v26, %v129_v27  ;;  %v137_v31 = vcombine.low %v115_v26, %v129_v27  ;;  %v2069_v52 = vld [vmem:[#allocation6 + $0xe4] ss:$36 sps:$4 sm:$0xff]  }
  0x45   :  { %1874 = vmatprep.subr.bf16.mxu1 %v1999_v34  ;;  %v140_v33 = vcombine.high %v122_v28, %v136_v29  ;;  %v139_v34 = vcombine.low %v122_v28, %v136_v29  ;;  %v2067_v54 = vld [vmem:[#allocation6 + $0xe0] ss:$36 sps:$4 sm:$0xff]  }
  0x46   :  { %v2070_v57 = vld [vmem:[#allocation6 + $0x120] ss:$36 sps:$4 sm:$0xff]  }
  0x47   :  { %1853 = vmatpush3.bf16.msra.mxu0 %v2000_v35  ;;  %v154_v35 = vpack.c.bf16 %v138_v30, %v138_v30  ;;  %v156_v38 = vpack.c.bf16 %v140_v33, %v140_v33  ;;  %v155_v39 = vpack.c.bf16 %v139_v34, %v139_v34 }
  0x48   :  { %1875 = vmatpush3.bf16.msra.mxu1 %v2001_v36  ;;  %1882 = vmatprep.subr.bf16.mxu0 %v2008_v44  ;;  %v153_v36 = vpack.c.bf16 %v137_v31, %v137_v31  ;;  %v2054_v44 = vld [vmem:[#allocation6 + $0x4c] ss:$36 sps:$4 sm:$0xff]  }
  0x49   :  { %1904 = vmatprep.subr.bf16.mxu1 %v2009_v47  ;;  %v2060_v47 = vld [vmem:[#allocation6 + $0x94] ss:$36 sps:$4 sm:$0xff]  }
  0x4a   :  { %709 = vmatmul.mubr.bf16.vlgmr.msra.gmra.mrb[0].mxu0 %v149_v55  ;;  %v2072_v55 = vld [vmem:[#allocation6 + $0x124] ss:$36 sps:$4 sm:$0xff]  }
  0x4b   :  { %749 = vmatmul.mubr.bf16.vlgmr.msra.gmra.mrb[0].mxu1 %v151_v58  ;;  %1883 = vmatpush3.bf16.msra.mxu0 %v2010_v50  ;;  %v2061_v50 = vld [vmem:[#allocation6 + $0x98] ss:$36 sps:$4 sm:$0xff]   ;;  %v2073_v58 = vld [vmem:[#allocation6 + $0x128] ss:$36 sps:$4 sm:$0xff]  }
  0x4c   :  { %1905 = vmatpush3.bf16.msra.mxu1 %v2011_v53  ;;  %1884 = vmatprep.subr.bf16.mxu0 %v2012_v56  ;;  %v2064_v53 = vld [vmem:[#allocation6 + $0xd8] ss:$36 sps:$4 sm:$0xff]   ;;  %v2075_v56 = vld [vmem:[#allocation6 + $0x12c] ss:$36 sps:$4 sm:$0xff]  }
  0x4d   :  { %1906 = vmatprep.subr.bf16.mxu1 %v2013_v59  ;;  %788 = vmatprep.mubr.bf16.mxu0 %v154_v35  ;;  %v2078_v59 = vld [vmem:[#allocation6 + $0x16c] ss:$36 sps:$4 sm:$0xff]  }
  0x4e   :  { %828 = vmatprep.mubr.bf16.mxu1 %v156_v38  ;;  %v2094_v38 = vld [vmem:[#allocation6 + $0x10] ss:$36 sps:$4 sm:$0xff]  }
  0x4f   :  { %1885 = vmatpush3.bf16.msra.mxu0 %v2014_v60  ;;  %v2081_v60 = vld [vmem:[#allocation6 + $0x174] ss:$36 sps:$4 sm:$0xff]  }
  0x50   :  { %1907 = vmatpush3.bf16.msra.mxu1 %v2015_v61  ;;  %1886 = vmatprep.subr.bf16.mxu0 %v2016_v62  ;;  %v2076_v61 = vld [vmem:[#allocation6 + $0x168] ss:$36 sps:$4 sm:$0xff]   ;;  %v2079_v62 = vld [vmem:[#allocation6 + $0x170] ss:$36 sps:$4 sm:$0xff]  }
  0x51   :  { %1908 = vmatprep.subr.bf16.mxu1 %v2017_v63  ;;  %v2084_v63 = vld [vmem:[#allocation6 + $0x1b4] ss:$36 sps:$4 sm:$0xff]  }
  0x53   :  { %1887 = vmatpush3.bf16.msra.mxu0 %v2018_v0  ;;  %v2087_v0 = vld [vmem:[#allocation6 + $0x1bc] ss:$36 sps:$4 sm:$0xff]  }
  0x54   :  { %1909 = vmatpush3.bf16.msra.mxu1 %v2019_v1  ;;  %1888 = vmatprep.subr.bf16.mxu0 %v2020_v2  ;;  %v2082_v1 = vld [vmem:[#allocation6 + $0x1b0] ss:$36 sps:$4 sm:$0xff]   ;;  %v2085_v2 = vld [vmem:[#allocation6 + $0x1b8] ss:$36 sps:$4 sm:$0xff]  }
  0x55   :  { %1910 = vmatprep.subr.bf16.mxu1 %v2021_v3  ;;  %v2090_v3 = vld [vmem:[#allocation6 + $0x1fc] ss:$36 sps:$4 sm:$0xff]  }
  0x57   :  { %1889 = vmatpush3.bf16.msra.mxu0 %v2022_v4  ;;  %v2093_v4 = vld [vmem:[#allocation6 + $0x204] ss:$36 sps:$4 sm:$0xff]  }
  0x58   :  { %1911 = vmatpush3.bf16.msra.mxu1 %v2023_v5  ;;  %1890 = vmatprep.subr.bf16.mxu0 %v2024_v6  ;;  %v2088_v5 = vld [vmem:[#allocation6 + $0x1f8] ss:$36 sps:$4 sm:$0xff]   ;;  %v2091_v6 = vld [vmem:[#allocation6 + $0x200] ss:$36 sps:$4 sm:$0xff]  }
  0x59   :  { %1912 = vmatprep.subr.bf16.mxu1 %v2025_v7  ;;  %v2096_v7 = vld [vmem:[#allocation6 + $0x14] ss:$36 sps:$4 sm:$0xff]  }
  0x5b   :  { %1891 = vmatpush3.bf16.msra.mxu0 %v2026_v8  ;;  %v2257_v8 = vmov 0  }
  0x5c   :  { %1913 = vmatpush3.bf16.msra.mxu1 %v2027_v9  ;;  %1892 = vmatprep.subr.bf16.mxu0 %v2028_v10  ;;  %v2099_v9 = vld [vmem:[#allocation6 + $0x1c] ss:$36 sps:$4 sm:$0xff]  }
  0x5d   :  { %1914 = vmatprep.subr.bf16.mxu1 %v2029_v11 }
  0x5f   :  { %1893 = vmatpush3.bf16.msra.mxu0 %v2030_v12  ;;  %v1696_v12 = vld [vmem:[%s2413_s2] ss:$0 sm:$0xff] }
  0x60   :  { %1915 = vmatpush3.bf16.msra.mxu1 %v2031_v13  ;;  %1894 = vmatprep.subr.bf16.mxu0 %v2032_v14 }
  0x61   :  { %1916 = vmatprep.subr.bf16.mxu1 %v2033_v15 }
  0x63   :  { %1895 = vmatpush3.bf16.msra.mxu0 %v2034_v16 }
  0x64   :  { %1917 = vmatpush3.bf16.msra.mxu1 %v2035_v17  ;;  %1896 = vmatprep.subr.bf16.mxu0 %v2036_v18 }
  0x65   :  { %1918 = vmatprep.subr.bf16.mxu1 %v2037_v19 }
  0x67   :  { %1897 = vmatpush3.bf16.msra.mxu0 %v2038_v20 }
  0x68   :  { %1919 = vmatpush3.bf16.msra.mxu1 %v2039_v21  ;;  %1335 = vmatprep.subr.bf16.mxu0 %v2048_v41  ;;  %v2102_v41 = vld [vmem:[#allocation6 + $0x5c] ss:$36 sps:$4 sm:$0xff]  }
  0x69   :  { %1376 = vmatprep.subr.bf16.mxu1 %v2051_v43  ;;  %v2100_v43 = vld [vmem:[#allocation6 + $0x58] ss:$36 sps:$4 sm:$0xff]  }
  0x6a   :  { %789 = vmatmul.mubr.bf16.vlgmr.msra.gmra.mrb[4].mxu0 %v153_v36 }
  0x6b   :  { %829 = vmatmul.mubr.bf16.vlgmr.msra.gmra.mrb[4].mxu1 %v155_v39  ;;  %1336 = vmatpush1.bf16.msra.mxu0 %v2046_v40  ;;  %v2097_v39 = vld [vmem:[#allocation6 + $0x18] ss:$36 sps:$4 sm:$0xff]  }
  0x6c   :  { %1377 = vmatpush1.bf16.msra.mxu1 %v2049_v42  ;;  %1337 = vmatprep.subr.bf16.mxu0 %v2054_v44  ;;  %v2105_v42 = vld [vmem:[#allocation6 + $0x64] ss:$36 sps:$4 sm:$0xff]  }
  0x6d   :  { %1378 = vmatprep.subr.bf16.mxu1 %v2057_v37  ;;  %1367 = vmatprep.mubr.bf16.mxu0 %v2257_v8  ;;  %v2103_v44 = vld [vmem:[#allocation6 + $0x60] ss:$36 sps:$4 sm:$0xff]  }
  0x6e   :  { %1408 = vmatprep.mubr.bf16.mxu1 %v2257_v8  ;;  %v2108_v37 = vld [vmem:[#allocation6 + $0xa4] ss:$36 sps:$4 sm:$0xff]  }
  0x6f   :  { %1338 = vmatpush1.bf16.msra.mxu0 %v2052_v45  ;;  %v2111_v45 = vld [vmem:[#allocation6 + $0xac] ss:$36 sps:$4 sm:$0xff]  }
  0x70   :  { %1379 = vmatpush1.bf16.msra.mxu1 %v2055_v46  ;;  %1339 = vmatprep.subr.bf16.mxu0 %v2060_v47  ;;  %v2106_v46 = vld [vmem:[#allocation6 + $0xa0] ss:$36 sps:$4 sm:$0xff]   ;;  %v2109_v47 = vld [vmem:[#allocation6 + $0xa8] ss:$36 sps:$4 sm:$0xff]  }
  0x71   :  { %1380 = vmatprep.subr.bf16.mxu1 %v2063_v48  ;;  %v2114_v48 = vld [vmem:[#allocation6 + $0xec] ss:$36 sps:$4 sm:$0xff]  }
  0x73   :  { %1340 = vmatpush1.bf16.msra.mxu0 %v2058_v49  ;;  %v2117_v49 = vld [vmem:[#allocation6 + $0xf4] ss:$36 sps:$4 sm:$0xff]  }
  0x74   :  { %1381 = vmatpush1.bf16.msra.mxu1 %v2061_v50  ;;  %1341 = vmatprep.subr.bf16.mxu0 %v2066_v51  ;;  %v2112_v50 = vld [vmem:[#allocation6 + $0xe8] ss:$36 sps:$4 sm:$0xff]   ;;  %v2115_v51 = vld [vmem:[#allocation6 + $0xf0] ss:$36 sps:$4 sm:$0xff]  }
  0x75   :  { %1382 = vmatprep.subr.bf16.mxu1 %v2069_v52  ;;  %v2120_v52 = vld [vmem:[#allocation6 + $0x134] ss:$36 sps:$4 sm:$0xff]  }
  0x77   :  { %1342 = vmatpush1.bf16.msra.mxu0 %v2064_v53  ;;  %v2123_v53 = vld [vmem:[#allocation6 + $0x13c] ss:$36 sps:$4 sm:$0xff]  }
  0x78   :  { %1383 = vmatpush1.bf16.msra.mxu1 %v2067_v54  ;;  %1343 = vmatprep.subr.bf16.mxu0 %v2072_v55  ;;  %v2118_v54 = vld [vmem:[#allocation6 + $0x130] ss:$36 sps:$4 sm:$0xff]   ;;  %v2121_v55 = vld [vmem:[#allocation6 + $0x138] ss:$36 sps:$4 sm:$0xff]  }
  0x79   :  { %1384 = vmatprep.subr.bf16.mxu1 %v2075_v56  ;;  %v2126_v56 = vld [vmem:[#allocation6 + $0x17c] ss:$36 sps:$4 sm:$0xff]  }
  0x7b   :  { %1344 = vmatpush1.bf16.msra.mxu0 %v2070_v57  ;;  %v2129_v57 = vld [vmem:[#allocation6 + $0x184] ss:$36 sps:$4 sm:$0xff]  }
  0x7c   :  { %1385 = vmatpush1.bf16.msra.mxu1 %v2073_v58  ;;  %1345 = vmatprep.subr.bf16.mxu0 %v2078_v59  ;;  %v2124_v58 = vld [vmem:[#allocation6 + $0x178] ss:$36 sps:$4 sm:$0xff]   ;;  %v2127_v59 = vld [vmem:[#allocation6 + $0x180] ss:$36 sps:$4 sm:$0xff]  }
  0x7d   :  { %1386 = vmatprep.subr.bf16.mxu1 %v2081_v60  ;;  %v2132_v60 = vld [vmem:[#allocation6 + $0x1c4] ss:$36 sps:$4 sm:$0xff]  }
  0x7f   :  { %1346 = vmatpush1.bf16.msra.mxu0 %v2076_v61  ;;  %v2135_v61 = vld [vmem:[#allocation6 + $0x1cc] ss:$36 sps:$4 sm:$0xff]  }
  0x80   :  { %1387 = vmatpush1.bf16.msra.mxu1 %v2079_v62  ;;  %1347 = vmatprep.subr.bf16.mxu0 %v2084_v63  ;;  %v2130_v62 = vld [vmem:[#allocation6 + $0x1c0] ss:$36 sps:$4 sm:$0xff]   ;;  %v2133_v63 = vld [vmem:[#allocation6 + $0x1c8] ss:$36 sps:$4 sm:$0xff]  }
  0x81   :  { %1388 = vmatprep.subr.bf16.mxu1 %v2087_v0  ;;  %v2138_v0 = vld [vmem:[#allocation6 + $0x20c] ss:$36 sps:$4 sm:$0xff]  }
  0x83   :  { %1348 = vmatpush1.bf16.msra.mxu0 %v2082_v1  ;;  %v2141_v1 = vld [vmem:[#allocation6 + $0x214] ss:$36 sps:$4 sm:$0xff]  }
  0x84   :  { %1389 = vmatpush1.bf16.msra.mxu1 %v2085_v2  ;;  %1349 = vmatprep.subr.bf16.mxu0 %v2090_v3  ;;  %v2136_v2 = vld [vmem:[#allocation6 + $0x208] ss:$36 sps:$4 sm:$0xff]   ;;  %v2139_v3 = vld [vmem:[#allocation6 + $0x210] ss:$36 sps:$4 sm:$0xff]  }
  0x85   :  { %1390 = vmatprep.subr.bf16.mxu1 %v2093_v4  ;;  %v2142_v4 = vld [vmem:[#allocation6 + $0x20] ss:$36 sps:$4 sm:$0xff]  }
  0x87   :  { %1350 = vmatpush1.bf16.msra.mxu0 %v2088_v5  ;;  %v2258_v5 = vmov 0.0  }
  0x88   :  { %1391 = vmatpush1.bf16.msra.mxu1 %v2091_v6  ;;  %1417 = vmatprep.subr.bf16.mxu0 %v2096_v7  ;;  %v2143_v6 = vld [vmem:[#allocation6 + $0x68] ss:$36 sps:$4 sm:$0xff]   ;;  %v2144_v7 = vld [vmem:[#allocation6 + $0xb0] ss:$36 sps:$4 sm:$0xff]  }
  0x89   :  { %1458 = vmatprep.subr.bf16.mxu1 %v2099_v9  ;;  %v2146_v9 = vld [vmem:[#allocation6 + $0x140] ss:$36 sps:$4 sm:$0xff]  }
 0x11d   :  { %v1854_v10 = vpop.f32.mrb[0].mxu0 }
 0x11e   :  { %v1876_v11 = vpop.f32.mrb[0].mxu1  ;;  %v1855_v13 = vpop.f32.mrb[1].mxu0 }
 0x11f   :  { %v1856_v14 = vadd.f32 %v1855_v13, %v1854_v10  ;;  %v1877_v15 = vpop.f32.mrb[1].mxu1  ;;  %v1857_v16 = vpop.f32.mrb[2].mxu0  ;;  %v2147_v10 = vld [vmem:[#allocation6 + $0x188] ss:$36 sps:$4 sm:$0xff]   ;;  %v924_v13 = vsub.s32 0, %v2324_v32 }
 0x120   :  { %v1878_v17 = vadd.f32 %v1877_v15, %v1876_v11  ;;  %v1879_v18 = vpop.f32.mrb[2].mxu1  ;;  %v1858_v19 = vpop.f32.mrb[3].mxu0  ;;  %v2148_v11 = vld [vmem:[#allocation6 + $0x1d0] ss:$36 sps:$4 sm:$0xff]   ;;  %v918_v15 = vld [vmem:[%s2415_s4] sm:$0xff]  ;;  %v928_v16 = vsub.s32 1, %v2324_v32 }
 0x121   :  { %v711_v20 = vadd.f32 %v1856_v14, %v1696_v12  ;;  %v1880_v21 = vpop.f32.mrb[3].mxu1  ;;  %v2149_v12 = vld [vmem:[#allocation6 + $0x218] ss:$36 sps:$4 sm:$0xff]   ;;  %v932_v14 = vsub.s32 2, %v2324_v32  ;;  %v936_v19 = vsub.s32 3, %v2324_v32 }
 0x123   :  { %v751_v22 = vadd.f32 %v1878_v17, %v711_v20  ;;  %v2260_v17 = vmov 1966171168   ;;  %v925_v20 = vrot.slane %v918_v15, %v924_v13  ;;  %v933_v21 = vrot.slane %v918_v15, %v932_v14 }
 0x124   :  { %v1560_v18 = vunpack.c.l.s4 %v2260_v17 }
 0x13d   :  { %v1898_v23 = vpop.f32.mrb[4].mxu0 }
 0x13e   :  { %v1920_v24 = vpop.f32.mrb[4].mxu1  ;;  %v1899_v25 = vpop.f32.mrb[5].mxu0 }
 0x13f   :  { %v1900_v26 = vadd.f32 %v1899_v25, %v1898_v23  ;;  %v1921_v27 = vpop.f32.mrb[5].mxu1  ;;  %v1901_v28 = vpop.f32.mrb[6].mxu0  ;;  %v1561_v23 = vunpack.c.0.s8 %v1560_v18 }
 0x140   :  { %v1922_v29 = vadd.f32 %v1921_v27, %v1920_v24  ;;  %v1923_v30 = vpop.f32.mrb[6].mxu1  ;;  %v1902_v31 = vpop.f32.mrb[7].mxu0  ;;  %v937_v24 = vrot.slane %v918_v15, %v936_v19 }
 0x141   :  { %v791_v33 = vadd.f32 %v1900_v26, %v751_v22  ;;  %v1924_v34 = vpop.f32.mrb[7].mxu1  ;;  %v929_v22 = vrot.slane %v918_v15, %v928_v16 }
 0x143   :  { %v831_v35 = vadd.f32 %v1922_v29, %v791_v33  ;;  %v1564_v33 = vsub.s32 %v1561_v23, %v2324_v32 }
 0x145   :  { %v836_v36 = vmax.f32 %v831_v35, 0.0 }
 0x147   :  { %v2364_v40 = vpack.c.bf16 %v836_v36, %v836_v36 }
 0x149   :  { %1368 = vmatmul.mubr.bf16.vlgmr.msra.gmra.mrb[8].mxu0 %v2364_v40  ;;  %1409 = vmatmul.mubr.bf16.vlgmr.msra.gmra.mrb[8].mxu1 %v2364_v40 }
 0x14a   :  { %1418 = vmatpush1.bf16.msra.mxu0 %v2094_v38  ;;  %1459 = vmatpush1.bf16.msra.mxu1 %v2097_v39 }
 0x14b   :  { %1419 = vmatprep.subr.bf16.mxu0 %v2102_v41  ;;  %1460 = vmatprep.subr.bf16.mxu1 %v2105_v42 }
 0x14c   :  { %1449 = vmatprep.mubr.bf16.mxu0 %v2257_v8  ;;  %1490 = vmatprep.mubr.bf16.mxu1 %v2257_v8  ;;  %v2145_v8 = vld [vmem:[#allocation6 + $0xf8] ss:$36 sps:$4 sm:$0xff]  }
 0x14e   :  { %1420 = vmatpush1.bf16.msra.mxu0 %v2100_v43  ;;  %1461 = vmatpush1.bf16.msra.mxu1 %v2103_v44 }
 0x14f   :  { %1421 = vmatprep.subr.bf16.mxu0 %v2108_v37  ;;  %1462 = vmatprep.subr.bf16.mxu1 %v2111_v45  ;;  %v940_v45 = vsub.s32 4, %v2324_v32 }
 0x152   :  { %1422 = vmatpush1.bf16.msra.mxu0 %v2106_v46  ;;  %1463 = vmatpush1.bf16.msra.mxu1 %v2109_v47  ;;  %v948_v46 = vsub.s32 6, %v2324_v32  ;;  %v944_v47 = vsub.s32 5, %v2324_v32 }
 0x153   :  { %1423 = vmatprep.subr.bf16.mxu0 %v2114_v48  ;;  %1464 = vmatprep.subr.bf16.mxu1 %v2117_v49  ;;  %v952_v48 = vsub.s32 7, %v2324_v32  ;;  %v941_v49 = vrot.slane %v918_v15, %v940_v45 }
 0x156   :  { %1424 = vmatpush1.bf16.msra.mxu0 %v2112_v50  ;;  %1465 = vmatpush1.bf16.msra.mxu1 %v2115_v51  ;;  %v949_v50 = vrot.slane %v918_v15, %v948_v46  ;;  %v945_v51 = vrot.slane %v918_v15, %v944_v47 }
 0x157   :  { %1425 = vmatprep.subr.bf16.mxu0 %v2120_v52  ;;  %1466 = vmatprep.subr.bf16.mxu1 %v2123_v53  ;;  %v953_v52 = vrot.slane %v918_v15, %v952_v48  ;;  %v1761_v15 = vld [vmem:[%s2415_s4 + $0x8] ss:$0 sm:$0xff]  ;;  %s2261_s4 = smov [#allocation8]  }
 0x158   :  { %s1670_s19 = sshll.u32 %s2261_s4, 4  ;;  %s1671_s19 = int_to_ptr.vmem [resolvable:$true] %s1670_s19 }
 0x159   :  { %s2198_s20 = scalar_lea.vmem %s1671_s19, 32  ;;  %p2203_p3 = scmp.lt.s32.totalorder %s1671_s19, %s1671_s19 }
 0x15a   :  { %1426 = vmatpush1.bf16.msra.mxu0 %v2118_v54  ;;  %1467 = vmatpush1.bf16.msra.mxu1 %v2121_v55  ;;  %p2199_p2 = scmp.ne.s32.totalorder %s1671_s19, %s2198_s20  ;;  %p2204_p4 = scmp.lt.s32.totalorder %s2198_s20, %s2198_s20 }
 0x15b   :  { %1427 = vmatprep.subr.bf16.mxu0 %v2126_v56  ;;  %1468 = vmatprep.subr.bf16.mxu1 %v2129_v57 }
 0x15c   :  { %p2205_p5 = por %p2204_p4, %p2203_p3 }
 0x15e   :  { %1428 = vmatpush1.bf16.msra.mxu0 %v2124_v58  ;;  %1469 = vmatpush1.bf16.msra.mxu1 %v2127_v59  ;;  %p2206_p6 = pnand %p2205_p5, %p2199_p2 }
 0x15f   :  { %1429 = vmatprep.subr.bf16.mxu0 %v2132_v60  ;;  %1470 = vmatprep.subr.bf16.mxu1 %v2135_v61 }
 0x162   :  { %1430 = vmatpush1.bf16.msra.mxu0 %v2130_v62  ;;  %1471 = vmatpush1.bf16.msra.mxu1 %v2133_v63 }
 0x163   :  { %1431 = vmatprep.subr.bf16.mxu0 %v2138_v0  ;;  %1472 = vmatprep.subr.bf16.mxu1 %v2141_v1 }
 0x166   :  { %1432 = vmatpush1.bf16.msra.mxu0 %v2136_v2  ;;  %1473 = vmatpush1.bf16.msra.mxu1 %v2139_v3 }
 0x167   :  { %1935 = vmatprep.subr.bf16.mxu0 %v2258_v5 }
 0x169   :  { %1450 = vmatmul.mubr.bf16.vlgmr.msra.gmra.mrb[12].mxu0 %v2364_v40  ;;  %1491 = vmatmul.mubr.bf16.vlgmr.msra.gmra.mrb[12].mxu1 %v2364_v40 }
 0x16a   :  { %1936 = vmatpush3.bf16.msra.mxu0 %v2142_v4  ;;  %1951 = vmatprep.mubr.msk.bf16.mxu0 %vm2259_vm0, %v2258_v5 }
 0x16b   :  { %1937 = vmatprep.subr.bf16.mxu0 %v2258_v5 }
 0x16e   :  { %1938 = vmatpush3.bf16.msra.mxu0 %v2143_v6 }
 0x16f   :  { %1939 = vmatprep.subr.bf16.mxu0 %v2258_v5 }
 0x172   :  { %1940 = vmatpush3.bf16.msra.mxu0 %v2144_v7 }
 0x173   :  { %1941 = vmatprep.subr.bf16.mxu0 %v2258_v5 }
 0x176   :  { %1942 = vmatpush3.bf16.msra.mxu0 %v2145_v8 }
 0x177   :  { %1943 = vmatprep.subr.bf16.mxu0 %v2258_v5 }
 0x17a   :  { %1944 = vmatpush3.bf16.msra.mxu0 %v2146_v9 }
 0x17b   :  { %1945 = vmatprep.subr.bf16.mxu0 %v2258_v5 }
 0x17e   :  { %1946 = vmatpush3.bf16.msra.mxu0 %v2147_v10 }
 0x17f   :  { %1947 = vmatprep.subr.bf16.mxu0 %v2258_v5 }
 0x182   :  { %1948 = vmatpush3.bf16.msra.mxu0 %v2148_v11 }
 0x183   :  { %1949 = vmatprep.subr.bf16.mxu0 %v2258_v5 }
 0x186   :  { %1950 = vmatpush3.bf16.msra.mxu0 %v2149_v12 }
 0x189   :  { %1952 = vmatmul.mubr.bf16.vlgmr.msra.gmra.mrb[16].mxu0 %v2364_v40 }
 0x21c   :  { %v1369_v25 = vpop.f32.mrb[8].mxu0  ;;  %v1410_v26 = vpop.f32.mrb[8].mxu1 }
 0x21d   :  { %v1370_v27 = vadd.f32 %v1369_v25, %v925_v20  ;;  %v1411_v28 = vadd.f32 %v1410_v26, %v933_v21  ;;  %v1371_v29 = vpop.f32.mrb[9].mxu0  ;;  %v1412_v30 = vpop.f32.mrb[9].mxu1 }
 0x21e   :  { %v1372_v31 = vadd.f32 %v1371_v29, %v929_v22  ;;  %v1413_v34 = vadd.f32 %v1412_v30, %v937_v24  ;;  %v1373_v35 = vpop.f32.mrb[10].mxu0  ;;  %v1414_v36 = vpop.f32.mrb[10].mxu1 }
 0x21f   :  { %v1374_v38 = vpop.f32.mrb[11].mxu0  ;;  %v1415_v39 = vpop.f32.mrb[11].mxu1 }
 0x220   :  { %v1834_v40 = vpack.c.bf16 %v1372_v31, %v1370_v27  ;;  %v1835_v41 = vpack.c.bf16 %v1413_v34, %v1411_v28 }
 0x222   :  { %v1565_v42 = vrot.slane %v1834_v40, %v1564_v33  ;;  %v1572_v43 = vrot.slane %v1835_v41, %v1564_v33 }
 0x224   :  { %v1587_v44 = vcombine.low %v1565_v42, %v1572_v43  ;;  %v1588_v37 = vcombine.high %v1565_v42, %v1572_v43 }
 0x226   :  { %v1597_v7 = vrot.slane %v1587_v44, %v1564_v33  ;;  %v1604_v8 = vrot.slane %v1588_v37, %v1564_v33 }
 0x23c   :  { %v1451_v53 = vpop.f32.mrb[12].mxu0  ;;  %v1492_v54 = vpop.f32.mrb[12].mxu1 }
 0x23d   :  { %v1452_v55 = vadd.f32 %v1451_v53, %v941_v49  ;;  %v1493_v56 = vadd.f32 %v1492_v54, %v949_v50  ;;  %v1453_v57 = vpop.f32.mrb[13].mxu0  ;;  %v1494_v58 = vpop.f32.mrb[13].mxu1 }
 0x23e   :  { %v1454_v59 = vadd.f32 %v1453_v57, %v945_v51  ;;  %v1495_v60 = vadd.f32 %v1494_v58, %v953_v52  ;;  %v1455_v61 = vpop.f32.mrb[14].mxu0  ;;  %v1496_v62 = vpop.f32.mrb[14].mxu1 }
 0x23f   :  { %v1456_v63 = vpop.f32.mrb[15].mxu0  ;;  %v1497_v0 = vpop.f32.mrb[15].mxu1 }
 0x240   :  { %v1836_v1 = vpack.c.bf16 %v1454_v59, %v1452_v55  ;;  %v1837_v2 = vpack.c.bf16 %v1495_v60, %v1493_v56 }
 0x242   :  { %v1579_v3 = vrot.slane %v1836_v1, %v1564_v33  ;;  %v1586_v4 = vrot.slane %v1837_v2, %v1564_v33 }
 0x244   :  { %v1589_v5 = vcombine.low %v1579_v3, %v1586_v4  ;;  %v1590_v6 = vcombine.high %v1579_v3, %v1586_v4 }
 0x246   :  { %v1611_v9 = vrot.slane %v1589_v5, %v1564_v33  ;;  %v1618_v10 = vrot.slane %v1590_v6, %v1564_v33 }
 0x248   :  { %v1619_v11 = vcombine.low %v1597_v7, %v1611_v9  ;;  %v1620_v12 = vcombine.high %v1597_v7, %v1611_v9  ;;  %v1621_v13 = vcombine.low %v1604_v8, %v1618_v10  ;;  %v1622_v14 = vcombine.high %v1604_v8, %v1618_v10 }
 0x24a   :  { %1627 = vst [vmem:[#allocation9] sm:$0xff] %v1619_v11  ;;  %1628 = vst [vmem:[#allocation9 + $0x8] sm:$0xff] %v1621_v13 }
 0x24b   :  { %1629 = vst [vmem:[#allocation9 + $0x10] sm:$0xff] %v1620_v12  ;;  %1630 = vst [vmem:[#allocation9 + $0x18] sm:$0xff] %v1622_v14 }
 0x25c   :  { %v1533_v16 = vpop.f32.mrb[16].mxu0 }
 0x25d   :  { %v1534_v17 = vadd.f32 %v1761_v15, %v1533_v16  ;;  %v1953_v18 = vpop.f32.mrb[17].mxu0 }
 0x25e   :  { %v1536_v19 = vpop.f32.mrb[18].mxu0 }
 0x25f   :  { %v1637_v20 = vsel %vm1636_vm1, %v1534_v17, -1e+30  ;;  %v1954_v21 = vpop.f32.mrb[19].mxu0 }
 0x260   :  { %v1645_v22 = vrot.slane %v1637_v20, 4 }
 0x262   :  { %v1646_v23 = vmax.f32 %v1637_v20, %v1645_v22 }
 0x264   :  { %v1647_v24 = vrot.slane %v1646_v23, 2 }
 0x266   :  { %v1648_v25 = vmax.f32 %v1646_v23, %v1647_v24 }
 0x268   :  { %v1649_v26 = vrot.slane %v1648_v25, 1 }
 0x26a   :  { %v1650_v27 = vmax.f32 %v1648_v25, %v1649_v26 }
 0x26c   :  { %v1651_v28 = vsub.f32 %v1637_v20, %v1650_v27 }
 0x26e   :  { %v1652_v29 = vmul.f32 1.442695, %v1651_v28 }
 0x270   :  { %2150 = vpow2.f32 %v1652_v29 }
 0x27a   :  { %v2151_v30 = vpop.eup %2150 }
 0x27b   :  { %v1654_v31 = vrot.slane %v2151_v30, 4 }
 0x27d   :  { %v1655_v33 = vadd.f32 %v2151_v30, %v1654_v31 }
 0x27f   :  { %v1656_v34 = vrot.slane %v1655_v33, 2 }
 0x281   :  { %v1657_v35 = vadd.f32 %v1656_v34, %v1655_v33 }
 0x283   :  { %v1658_v32 = vrot.slane %v1657_v35, 1 }
 0x285   :  { %v1659_v36 = vadd.f32 %v1658_v32, %v1657_v35 }
 0x287   :  { %2152 = vrcp.f32 %v1659_v36 }
 0x291   :  { %v2153_v38 = vpop.eup %2152 }
 0x292   :  { %v1661_v39 = vmul.f32 %v2153_v38, %v2151_v30 }
 0x294   :  { %1663 = vst.msk [vmem:[#allocation8] sm:$0x3] %vm1662_vm2, %v1661_v39 }
 0x295   :  { %2209 = shalt.err (!%p2206_p6)
}
 0x296   :  { %s2210_s22 = scalar_lea.hbm %s2416_s5, 32 }
 0x297   :  { %p2211_p7 = scmp.ne.s32.totalorder %s2416_s5, %s2210_s22  ;;  %p2214_p8 = scmp.lt.u32.totalorder %s2210_s22, %s2416_s5 }
 0x299   :  { %p2216_p9 = pnand %p2214_p8, %p2211_p7 }
 0x29b   :  { %2219 = shalt.err (!%p2216_p9)
}
 0x29c   :  { %1673 = dma.vmem_to_hbm [thread:$0]  %s1671_s19, 32, %s2416_s5, [#allocation5]  }
 0x29d   :  { %1678 = vsyncadd [#allocation10], 384  ;;  %s2262_s28 = smov [#allocation9]  }
 0x29e   :  { %s1679_s29 = sshll.u32 %s2262_s28, 4  ;;  %s1680_s29 = int_to_ptr.vmem [resolvable:$true] %s1679_s29 }
 0x29f   :  { %s2220_s30 = scalar_lea.vmem %s1680_s29, 128  ;;  %s2224_s7 = scalar_lea.vmem %s1680_s29, 512 }
 0x2a0   :  { %p2221_p10 = scmp.ne.s32.totalorder %s1680_s29, %s2220_s30  ;;  %p2225_p11 = scmp.lt.s32.totalorder %s1680_s29, %s1680_s29 }
 0x2a1   :  { %p2226_p12 = scmp.lt.s32.totalorder %s2224_s7, %s2220_s30 }
 0x2a3   :  { %p2227_p13 = por %p2226_p12, %p2225_p11 }
 0x2a5   :  { %p2228_p0 = pnand %p2227_p13, %p2221_p10 }
 0x2a7   :  { %2231 = shalt.err (!%p2228_p0)
}
 0x2a8   :  { %s2232_s10 = scalar_lea.hbm %s2417_s6, 128 }
 0x2a9   :  { %p2233_p1 = scmp.ne.s32.totalorder %s2417_s6, %s2232_s10  ;;  %p2236_p2 = scmp.lt.u32.totalorder %s2232_s10, %s2417_s6 }
 0x2ab   :  { %p2238_p3 = pnand %p2236_p2, %p2233_p1 }
 0x2ad   :  { %2241 = shalt.err (!%p2238_p3)
}
 0x2ae   :  { %s2263_s14 = smov 128   ;;  %s2264_s0 = smov 8  }
 0x2af   :  { %1685 = dma.vmem_to_hbm [thread:$0]  %s1680_s29, 128, %s2417_s6, [#allocation10], %s2263_s14, %s2263_s14, %s2264_s0  }
 0x2b0   :  { %2246 = dma.done.wait [#allocation5], 32  }
 0x2b1   :  { %2247 = vsyncadd [#allocation5], 4294967264 }
 0x2b2   :  { %2248 = dma.done.wait [#allocation10], 512  }
 0x2b3   :  { %2249 = vsyncadd [#allocation10], 4294966784 }
 0x2b4   :  { %1692 = vsyncpa [#allocation4], 1 }
 0x2b5   :  { %1693 = vsyncpa [#allocation7], 1 }
 0x2b6   :  { %1694 = vsyncpa [#allocation5], 1 }
 0x2b7   :  { %1695 = vsyncpa [#allocation10], 1 }

</bundles_post_ra>
